<compile_context>
chip_gen: v5e
topology: v5e:2x2
jax: 0.10.0
libtpu: 0.0.40
codegen_flags: <defaults>
</compile_context>

<pallas_src>
import functools

import jax
import jax.numpy as jnp
from jax.experimental import pallas as pl
from jax.experimental.pallas import tpu as pltpu


def _sublane_pack(dtype):
    """Sublane packing granularity: 8 for 4-byte, 16 for 2-byte, 32 for 1-byte."""
    itemsize = jnp.dtype(dtype).itemsize
    return 8 * max(1, 4 // itemsize)


def _padded_rows(c, dtype):
    pack = _sublane_pack(dtype)
    return -(-c // pack) * pack


def _tpu_generation():
    try:
        kind = jax.devices()[0].device_kind.lower()
    except Exception:
        return 0
    for g in (7, 6, 5, 4):
        if f"v{g}" in kind:
            return g
    return 0


def _gen_params():
    gen = _tpu_generation()
    if gen in (5, 6):
        # 128 MiB physical VMEM: big streaming blocks, explicit generous limit.
        return dict(
            target_block_bytes=6 * 1024 * 1024,   # combined (x + t), padded
            full_extent_cap=12 * 1024 * 1024,
            vmem_limit=64 * 1024 * 1024,
            want_min_parallel=1,
        )
    # v7x (64 MiB VMEM / TC, 2 TCs) or unknown: conservative + keep both cores busy.
    return dict(
        target_block_bytes=2 * 1024 * 1024 + 512 * 1024,
        full_extent_cap=5 * 1024 * 1024,
        vmem_limit=40 * 1024 * 1024,
        want_min_parallel=2,
    )


# --------------------------------------------------------------------------
# Path A: channel axis fits in one block (the common case).
# --------------------------------------------------------------------------
def _ce_kernel(x_ref, t_ref, o_ref, *, hw_total, needs_mask):
    """x_ref, t_ref: (C, tile_hw) blocks of the (N, C, H*W) tensors.

    Channel (softmax) axis on sublanes, spatial axis lane-dense.  Writes this
    tile's partial loss sum broadcast over an (8, 128) output block.
    """
    j = pl.program_id(1)
    tile_hw = x_ref.shape[-1]

    x = x_ref[...].astype(jnp.float32)                       # (C, tile_hw)
    t = t_ref[...]                                           # native dtype

    # numerically-stable log-sum-exp over the channel axis (axis 0)
    m = jnp.max(x, axis=0, keepdims=True)                    # (1, tile_hw)
    shifted = x - m
    lse = jnp.log(jnp.sum(jnp.exp(shifted), axis=0, keepdims=True))

    # loss(col) = sum_c -t*(shifted - lse) = lse*sum_c(t) - sum_c(t*shifted)
    t_sum = jnp.sum(t, axis=0, keepdims=True, dtype=jnp.float32)
    ts_sum = jnp.sum(t * shifted, axis=0, keepdims=True)     # promotes to f32
    loss_col = lse * t_sum - ts_sum                          # (1, tile_hw)

    if needs_mask:
        last = pl.num_programs(1) - 1

        @pl.when(j == last)
        def _():
            # select (not multiply) so garbage NaN/Inf in padded lanes is dropped
            col = jax.lax.broadcasted_iota(jnp.int32, (1, tile_hw), 1) + j * tile_hw
            masked = jnp.where(col < hw_total, loss_col, 0.0)
            o_ref[...] = jnp.full((8, 128), jnp.sum(masked), dtype=jnp.float32)

        @pl.when(j != last)
        def _():
            o_ref[...] = jnp.full((8, 128), jnp.sum(loss_col), dtype=jnp.float32)
    else:
        o_ref[...] = jnp.full((8, 128), jnp.sum(loss_col), dtype=jnp.float32)


def _cross_entropy_untiled(x3, t3, *, tile_hw, vmem_limit):
    N, C, HW = x3.shape
    num_j = pl.cdiv(HW, tile_hw)
    needs_mask = (HW % tile_hw) != 0

    x_itemsize = jnp.dtype(x3.dtype).itemsize
    t_itemsize = jnp.dtype(t3.dtype).itemsize
    cost = pl.CostEstimate(
        flops=8 * N * C * HW,
        transcendentals=N * C * HW + N * HW,
        bytes_accessed=N * C * HW * (x_itemsize + t_itemsize)
        + N * num_j * 8 * 128 * 4,
    )

    kernel = functools.partial(_ce_kernel, hw_total=HW, needs_mask=needs_mask)

    partials = pl.pallas_call(
        kernel,
        out_shape=jax.ShapeDtypeStruct((N, num_j, 8, 128), jnp.float32),
        grid_spec=pltpu.PrefetchScalarGridSpec(
            num_scalar_prefetch=0,
            grid=(N, num_j),
            in_specs=[
                pl.BlockSpec((None, C, tile_hw), lambda n, j: (n, 0, j)),
                pl.BlockSpec((None, C, tile_hw), lambda n, j: (n, 0, j)),
            ],
            out_specs=pl.BlockSpec((None, None, 8, 128), lambda n, j: (n, j, 0, 0)),
        ),
        compiler_params=pltpu.CompilerParams(
            dimension_semantics=("parallel", "parallel"),
            vmem_limit_bytes=vmem_limit,
        ),
        cost_estimate=cost,
    )(x3, t3)
    return jnp.sum(partials[:, :, 0, 0])


# --------------------------------------------------------------------------
# Path B: very large C -> online softmax with C tiled as an "arbitrary" axis.
# --------------------------------------------------------------------------
def _ce_kernel_ctiled(x_ref, t_ref, o_ref, m_sc, s_sc, tsum_sc, txsum_sc, *,
                      c_total, hw_total, needs_hw_mask, needs_c_mask):
    j = pl.program_id(1)
    k = pl.program_id(2)
    num_k = pl.num_programs(2)
    tile_c, tile_hw = x_ref.shape

    @pl.when(k == 0)
    def _():
        m_sc[...] = jnp.full_like(m_sc, -jnp.inf)
        s_sc[...] = jnp.zeros_like(s_sc)
        tsum_sc[...] = jnp.zeros_like(tsum_sc)
        txsum_sc[...] = jnp.zeros_like(txsum_sc)

    x = x_ref[...].astype(jnp.float32)                       # (tile_c, tile_hw)
    t = t_ref[...]
    tx = t * x                                               # f32 via promotion

    if needs_c_mask:
        row = jax.lax.broadcasted_iota(jnp.int32, (tile_c, tile_hw), 0) + k * tile_c
        valid = row < c_total
        x = jnp.where(valid, x, -jnp.inf)                    # drops out of exp
        t = jnp.where(valid, t, jnp.zeros_like(t))
        tx = jnp.where(valid, tx, 0.0)

    # online log-sum-exp over the channel axis
    m_prev = m_sc[...]
    m_chunk = jnp.max(x, axis=0, keepdims=True)
    m_new = jnp.maximum(m_prev, m_chunk)
    s_sc[...] = s_sc[...] * jnp.exp(m_prev - m_new) + jnp.sum(
        jnp.exp(x - m_new), axis=0, keepdims=True)
    m_sc[...] = m_new

    tsum_sc[...] = tsum_sc[...] + jnp.sum(t, axis=0, keepdims=True,
                                          dtype=jnp.float32)
    txsum_sc[...] = txsum_sc[...] + jnp.sum(tx, axis=0, keepdims=True)

    @pl.when(k == num_k - 1)
    def _():
        lse = m_sc[...] + jnp.log(s_sc[...])
        # loss(col) = lse * sum_c t - sum_c t*x
        loss_col = lse * tsum_sc[...] - txsum_sc[...]
        if needs_hw_mask:
            col = jax.lax.broadcasted_iota(jnp.int32, (1, tile_hw), 1) + j * tile_hw
            loss_col = jnp.where(col < hw_total, loss_col, 0.0)
        o_ref[...] = jnp.full((8, 128), jnp.sum(loss_col), dtype=jnp.float32)


def _cross_entropy_ctiled(x3, t3, *, tile_c, tile_hw, vmem_limit):
    N, C, HW = x3.shape
    num_j = pl.cdiv(HW, tile_hw)
    num_k = pl.cdiv(C, tile_c)
    needs_hw_mask = (HW % tile_hw) != 0
    needs_c_mask = (C % tile_c) != 0

    x_itemsize = jnp.dtype(x3.dtype).itemsize
    t_itemsize = jnp.dtype(t3.dtype).itemsize
    cost = pl.CostEstimate(
        flops=10 * N * C * HW,
        transcendentals=N * C * HW + 2 * N * HW * num_k,
        bytes_accessed=N * C * HW * (x_itemsize + t_itemsize)
        + N * num_j * 8 * 128 * 4,
    )

    kernel = functools.partial(
        _ce_kernel_ctiled, c_total=C, hw_total=HW,
        needs_hw_mask=needs_hw_mask, needs_c_mask=needs_c_mask)

    partials = pl.pallas_call(
        kernel,
        out_shape=jax.ShapeDtypeStruct((N, num_j, 8, 128), jnp.float32),
        grid_spec=pltpu.PrefetchScalarGridSpec(
            num_scalar_prefetch=0,
            grid=(N, num_j, num_k),
            in_specs=[
                pl.BlockSpec((None, tile_c, tile_hw), lambda n, j, k: (n, k, j)),
                pl.BlockSpec((None, tile_c, tile_hw), lambda n, j, k: (n, k, j)),
            ],
            out_specs=pl.BlockSpec((None, None, 8, 128),
                                   lambda n, j, k: (n, j, 0, 0)),
            scratch_shapes=[pltpu.VMEM((1, tile_hw), jnp.float32)] * 4,
        ),
        compiler_params=pltpu.CompilerParams(
            dimension_semantics=("parallel", "parallel", "arbitrary"),
            vmem_limit_bytes=vmem_limit,
        ),
        cost_estimate=cost,
    )(x3, t3)
    return jnp.sum(partials[:, :, 0, 0])


# --------------------------------------------------------------------------
# Public wrapper.
# --------------------------------------------------------------------------
def cross_entropy_loss(inp, target, *, _force_c_tile=None):
    """inp: (N, C, H, W); target: any shape with N*C*H*W elements."""
    N, C, H, W = inp.shape
    HW = H * W
    target = target.reshape(inp.shape)              # torch: target.reshape(input.shape)

    # Free reshapes (no data movement, no transpose): softmax axis stays at
    # dim 1, spatial axis lands on lanes inside the kernel.
    x3 = inp.reshape(N, C, HW)
    t3 = target.reshape(N, C, HW)

    params = _gen_params()
    target_block_bytes = params["target_block_bytes"]
    full_extent_cap = params["full_extent_cap"]
    vmem_limit = params["vmem_limit"]
    want_min_parallel = params["want_min_parallel"]

    x_itemsize = jnp.dtype(inp.dtype).itemsize
    t_itemsize = jnp.dtype(target.dtype).itemsize

    # Sublane-padded VMEM accounting (8/16/32 rows depending on dtype width).
    pad_c_x = _padded_rows(C, inp.dtype)
    pad_c_t = _padded_rows(C, target.dtype)
    bytes_per_col = pad_c_x * x_itemsize + pad_c_t * t_itemsize  # x + t, per lane col

    use_c_tiled = (_force_c_tile is not None) or (bytes_per_col * 128 > full_extent_cap)

    if use_c_tiled:
        # Large-C fallback: online softmax, C tiled along an "arbitrary" axis.
        tile_hw = HW if HW <= 512 else 512
        pack = max(_sublane_pack(inp.dtype), _sublane_pack(target.dtype))
        if _force_c_tile is not None:
            tile_c = max(pack, (_force_c_tile // pack) * pack)
        else:
            tile_c = max(pack, (target_block_bytes
                                // ((x_itemsize + t_itemsize) * tile_hw))
                         // pack * pack)
        tile_c = min(tile_c, -(-C // pack) * pack)
        total = _cross_entropy_ctiled(x3, t3, tile_c=tile_c, tile_hw=tile_hw,
                                      vmem_limit=vmem_limit)
    else:
        # Lane-axis tiling with padded-bytes accounting.
        tile_hw = max(128, (target_block_bytes // bytes_per_col) // 128 * 128)
        if bytes_per_col * HW <= full_extent_cap or tile_hw >= HW:
            tile_hw = HW                            # full-extent: contiguous DMA, no mask
        # v7x-class: make sure >= 2 parallel grid steps so both TCs are used.
        if (want_min_parallel >= 2 and N * pl.cdiv(HW, tile_hw) < 2 and HW >= 256):
            tile_hw = (HW // 2) // 128 * 128
        total = _cross_entropy_untiled(x3, t3, tile_hw=tile_hw,
                                       vmem_limit=vmem_limit)

    return total / float(N * HW)


def cross_entropy_loss_ref(inp, target):
    target = target.reshape(inp.shape)
    lsm = jax.nn.log_softmax(inp.astype(jnp.float32), axis=1)
    loss = jnp.sum(-target.astype(jnp.float32) * lsm, axis=1)
    return jnp.mean(loss)


if __name__ == "__main__":
    key = jax.random.PRNGKey(0)
    k1, k2, k3, k4 = jax.random.split(key, 4)

    # Primary shape implied by the module (NCHW, softmax over C).
    N, C, H, W = 2, 4, 16, 16
    x = jax.random.normal(k1, (N, C, H, W), dtype=jnp.float32)
    # target is "soft" (same numel as input); PyTorch reshapes it to input.shape
    tgt = jax.random.uniform(k2, (N * C * H * W,), dtype=jnp.float32)

    loss = jax.block_until_ready(cross_entropy_loss(x, tgt))
    ref = cross_entropy_loss_ref(x, tgt)
    assert jnp.allclose(loss, ref, rtol=1e-5, atol=1e-5), (loss, ref)

    # Also exercise the large-C online-softmax fallback with a small forced
    # C tile (including the non-divisible-C channel mask) to cover that path.
    N2, C2, H2, W2 = 1, 12, 8, 16
    x2 = jax.random.normal(k3, (N2, C2, H2, W2), dtype=jnp.float32)
    t2 = jax.random.uniform(k4, (N2, C2, H2, W2), dtype=jnp.float32)
    loss2 = jax.block_until_ready(cross_entropy_loss(x2, t2, _force_c_tile=8))
    ref2 = cross_entropy_loss_ref(x2, t2)
    assert jnp.allclose(loss2, ref2, rtol=1e-5, atol=1e-5), (loss2, ref2)

    print("KERNEL_OK")
</pallas_src>

<mosaic_0001>
module attributes {stable_mosaic.version = 11 : i64} {
  func.func @_ce_kernel(%arg0: i32, %arg1: i32, %arg2: memref<1x4x256xf32, #tpu.memory_space<vmem>>, %arg3: memref<1x4x256xf32, #tpu.memory_space<vmem>>, %arg4: memref<1x1x8x128xf32, #tpu.memory_space<vmem>>) attributes {dimension_semantics = [#tpu.dimension_semantics<parallel>, #tpu.dimension_semantics<parallel>], iteration_bounds = array<i64: 2, 1>, scalar_prefetch = 0 : i64, scratch_operands = 0 : i64, tpu.core_type = #tpu.core_type<tc>, window_params = [{transform_indices = @transform_0, window_bounds = array<i64: 1, 4, 256>}, {transform_indices = @transform_1, window_bounds = array<i64: 1, 4, 256>}, {transform_indices = @transform_2, window_bounds = array<i64: 1, 1, 8, 128>}]} {
    %c0 = arith.constant 0 : index
    %c0_0 = arith.constant 0 : index
    %c0_1 = arith.constant 0 : index
    %0 = vector.load %arg2[%c0, %c0_0, %c0_1] : memref<1x4x256xf32, #tpu.memory_space<vmem>>, vector<1x4x256xf32>
    %1 = vector.shape_cast %0 : vector<1x4x256xf32> to vector<4x256xf32>
    %c0_2 = arith.constant 0 : index
    %c0_3 = arith.constant 0 : index
    %c0_4 = arith.constant 0 : index
    %2 = vector.load %arg3[%c0_2, %c0_3, %c0_4] : memref<1x4x256xf32, #tpu.memory_space<vmem>>, vector<1x4x256xf32>
    %3 = vector.shape_cast %2 : vector<1x4x256xf32> to vector<4x256xf32>
    %cst = arith.constant dense<0xFF800000> : vector<256xf32>
    %4 = vector.multi_reduction <maximumf>, %1, %cst [0] : vector<4x256xf32> to vector<256xf32>
    %5 = vector.shape_cast %4 : vector<256xf32> to vector<1x256xf32>
    %6 = vector.broadcast %5 : vector<1x256xf32> to vector<4x256xf32>
    %7 = arith.subf %1, %6 : vector<4x256xf32>
    %8 = math.exp %7 : vector<4x256xf32>
    %cst_5 = arith.constant dense<0.000000e+00> : vector<256xf32>
    %9 = vector.multi_reduction <add>, %8, %cst_5 [0] : vector<4x256xf32> to vector<256xf32>
    %10 = vector.shape_cast %9 : vector<256xf32> to vector<1x256xf32>
    %11 = math.log %10 : vector<1x256xf32>
    %cst_6 = arith.constant dense<0.000000e+00> : vector<256xf32>
    %12 = vector.multi_reduction <add>, %3, %cst_6 [0] : vector<4x256xf32> to vector<256xf32>
    %13 = vector.shape_cast %12 : vector<256xf32> to vector<1x256xf32>
    %14 = arith.mulf %3, %7 : vector<4x256xf32>
    %cst_7 = arith.constant dense<0.000000e+00> : vector<256xf32>
    %15 = vector.multi_reduction <add>, %14, %cst_7 [0] : vector<4x256xf32> to vector<256xf32>
    %16 = vector.shape_cast %15 : vector<256xf32> to vector<1x256xf32>
    %17 = arith.mulf %11, %13 : vector<1x256xf32>
    %18 = arith.subf %17, %16 : vector<1x256xf32>
    %19 = vector.shape_cast %18 : vector<1x256xf32> to vector<1x1x256xf32>
    %cst_8 = arith.constant dense<0.000000e+00> : vector<1xf32>
    %20 = vector.multi_reduction <add>, %19, %cst_8 [1, 2] : vector<1x1x256xf32> to vector<1xf32>
    %21 = vector.shape_cast %20 : vector<1xf32> to vector<1x1x1xf32>
    %22 = vector.extract %21[0, 0, 0] : f32 from vector<1x1x1xf32>
    %23 = vector.broadcast %22 : f32 to vector<8x128xf32>
    %c0_9 = arith.constant 0 : index
    %c0_10 = arith.constant 0 : index
    %c0_11 = arith.constant 0 : index
    %c0_12 = arith.constant 0 : index
    %24 = vector.load %arg4[%c0_9, %c0_10, %c0_11, %c0_12] : memref<1x1x8x128xf32, #tpu.memory_space<vmem>>, vector<1x1x8x128xf32>
    %25 = vector.shape_cast %24 : vector<1x1x8x128xf32> to vector<8x128xf32>
    %26 = vector.shape_cast %23 : vector<8x128xf32> to vector<1x1x8x128xf32>
    tpu.vector_store %arg4[%c0_9, %c0_10, %c0_11, %c0_12], %26 {strides = array<i32>} : memref<1x1x8x128xf32, #tpu.memory_space<vmem>>, vector<1x1x8x128xf32>,
    return
  }
  func.func @transform_0(%arg0: i32, %arg1: i32) -> (i32, i32, i32) {
    %c0_i32 = arith.constant 0 : i32
    %c0_i32_0 = arith.constant 0 : i32
    return %arg0, %c0_i32, %arg1 : i32, i32, i32
  }
  func.func @transform_1(%arg0: i32, %arg1: i32) -> (i32, i32, i32) {
    %c0_i32 = arith.constant 0 : i32
    %c0_i32_0 = arith.constant 0 : i32
    return %arg0, %c0_i32, %arg1 : i32, i32, i32
  }
  func.func @transform_2(%arg0: i32, %arg1: i32) -> (i32, i32, i32, i32) {
    %c0_i32 = arith.constant 0 : i32
    %c0_i32_0 = arith.constant 0 : i32
    %c0_i32_1 = arith.constant 0 : i32
    return %arg0, %arg1, %c0_i32, %c0_i32_0 : i32, i32, i32, i32
  }
}

</mosaic_0001>

<bundles_post_ra>
// kernel: tpu_custom_call.1
= control target key start
LH: loop header
LB: loop body
LE: loop exit
PB: predicated region body
PF: predicated region fallthrough
CT: control target
= control target key end

     0   :  { %7 = vsyncpa [#allocation3], 0  ;;  %s866_s0 = inlined_call_operand.hbm [shape: f32[2,4,256], index: 0, kind: input, shape index: {}]   ;;  %s867_s1 = inlined_call_operand.hbm [shape: f32[2,4,256], index: 1, kind: input, shape index: {}]   ;;  %s868_s2 = inlined_call_operand.hbm [shape: f32[2,1,8,128], index: 2, kind: output, shape index: {}]  }
   0x1   :  { %9 = vsyncpa [#allocation3 + $0x1], 0 }
   0x2   :  { %10 = vsyncpa [#allocation6], 0 }
   0x3   :  { %12 = vsyncpa [#allocation6 + $0x1], 0 }
   0x4   :  { %13 = vsyncpa [#allocation4], 0 }
   0x5   :  { %15 = vsyncpa [#allocation4 + $0x1], 0  ;;  %s724_s9 = smov 0   ;;  %s726_s10 = smov 0  }
   0x6   :  { %s728_s11 = smov 0   ;;  %s730_s12 = smov 0  }
   0x7   :  { %s732_s13 = smov 0   ;;  %s734_s14 = smov 0  }
   0x8 LB: > { %s466_s15 = sadd.s32 4294967295, %s707_s14   ;;  %s467_s16 = sadd.s32 4294967294, %s707_s14   ;;  %s707_s14 = sphi %s734_s14, %s21_s14   ;;  %s703_s13 = sphi %s732_s13, %s877_s13   ;;  %s699_s12 = sphi %s730_s12, %s876_s12   ;;  %s695_s11 = sphi %s728_s11, %s875_s11   ;;  %s691_s10 = sphi %s726_s10, %s874_s10   ;;  %s687_s9 = sphi %s724_s9, %s873_s9  }
   0x9   : > { %s33_s17 = sadd.s32 1, %s703_s13  ;;  %s42_s18 = sadd.s32 1, %s695_s11 }
   0xa   : > { %p35_p0 = scmp.ge.s32.totalorder %s33_s17, 2  ;;  %p49_p1 = scmp.ne.s32.totalorder %s695_s11, %s691_s10 }
   0xb   : > { %p50_p2 = scmp.eq.s32.totalorder %s707_s14, 0  ;;  %p55_p3 = scmp.ne.s32.totalorder %s691_s10, %s687_s9 }
   0xc   : > { %s879_s17 = smov (%p35_p0, %s33_s17), 0  ;;  %p56_p5 = scmp.eq.s32.totalorder %s466_s15, 0 }
   0xd   : > { %p765_p4 = por %p50_p2, %p49_p1  ;;  %s37_s20 = ssub.s32 %s703_s13, %s879_s17 }
   0xe   : > { %p109_p6 = scmp.eq.s32.totalorder %s466_s15, 1  ;;  %p40_p7 = scmp.eq.s32.totalorder %s37_s20, 0 }
   0xf   : > { %p771_p8 = por %p56_p5, %p55_p3  ;;  %p115_p10 = scmp.eq.s32.totalorder %s467_s16, 1 }
  0x10   : > { %p775_p9 = por %p109_p6, %p49_p1  ;;  %p469_p12 = scmp.ge.s32.totalorder %s707_s14, 2 }
  0x11   : > { %s780_s23 = scalar_select %p40_p7, %s695_s11, %s42_s18  }
  0x12   : > { %p782_p11 = por %p115_p10, %p55_p3  ;;  %p505_p13 = scmp.lt.s32.totalorder %s707_s14, 2 }
  0x13   : > { %s135_s25 = sand.u32 1, %s695_s11   ;;  %s484_s27 = sshll.u32 %s703_s13, 3 }
  0x14   : > { %s470_s26 = sshll.u32 %s135_s25, 3  ;;  %s146_s30 = scalar_lea.hbm %s866_s0, %s484_s27 }
  0x15   : > { %s139_s3 = scalar_lea.vmem [#allocation2], %s470_s26  ;;  %s148_s5 = sshll.u32 %s146_s30, 4  ;;  %s149_s5 = int_to_ptr.hbm [resolvable:$true] %s148_s5 }
  0x16   : > { %s150_s4 = sshll.u32 %s139_s3, 4  ;;  %p495_p0 = pnand %p505_p13, %p765_p4  ;;  %s151_s4 = int_to_ptr.vmem [resolvable:$true] %s150_s4 }
  0x17   : > { %p476_p1 = scmp.ge.s32.totalorder %s707_s14, 1  ;;  %p177_p2 = scmp.lt.s32.totalorder %s707_s14, 3 }
  0x18   : > { %s136_s6 = scalar_lea.sflag [#allocation3], %s135_s25  ;;  %s168_s15 = scalar_lea.hbm %s867_s1, %s484_s27 }
  0x19   : > { %497 = dma.hbm_to_vmem [thread:$0]  (!%p495_p0), %s149_s5, 128, %s151_s4, %s136_s6  }
  0x1a   : > { %p178_p3 = pnand %p476_p1, %p177_p2  ;;  %s161_s16 = scalar_lea.vmem [#allocation5], %s470_s26 }
  0x1b   : > { %s172_s18 = sshll.u32 %s161_s16, 4  ;;  %s170_s20 = sshll.u32 %s168_s15, 4  ;;  %s173_s18 = int_to_ptr.vmem [resolvable:$true] %s172_s18  ;;  %s171_s20 = int_to_ptr.hbm [resolvable:$true] %s170_s20 }
  0x1c   : > { %s158_s28 = scalar_lea.sflag [#allocation6], %s135_s25  ;;  %181 = sbr.rel (%p178_p3) target bundleno = 296 (0x128), region = 28 }
  0x1d   : > { %500 = dma.hbm_to_vmem [thread:$0]  (!%p495_p0), %s171_s20, 128, %s173_s18, %s158_s28  }
  0x1e   : > { %s801_s19 = sand.u32 (!%p178_p3), 1, %s691_s10  }
  0x1f   : > { %s804_s29 = sshll.u32 (!%p178_p3), %s801_s19, 3  ;;  %s184_s30 = scalar_lea.sflag (!%p178_p3), [#allocation3], %s801_s19 }
  0x20   : > { %s187_s3 = scalar_lea.vmem (!%p178_p3), [#allocation2], %s804_s29 }
  0x21   : > { %674 = dma.done.wait (%p771_p8), %s184_s30, 128  }
  0x22   : > { %676 = vsyncadd (%p771_p8), %s184_s30, 4294967168  ;;  %s194_s25 = scalar_lea.sflag [#allocation6], %s801_s19  ;;  %s197_s26 = scalar_lea.vmem [#allocation5], %s804_s29 }
  0x23   : > { %678 = dma.done.wait (%p771_p8), %s194_s25, 128  }
  0x24   : > { %680 = vsyncadd (%p771_p8), %s194_s25, 4294967168  ;;  %v226_v0 = vld [vmem:[%s187_s3] sm:$0xff]  ;;  %vm234_vm0 = vcmask 1043456   ;;  %v227_v22 = vld [vmem:[%s197_s26] sm:$0xff]  ;;  %vm326_vm1 = vcmask 1040384   ;;  %s481_s21 = sshll.u32 %s699_s12, 3 }
  0x25   : > { %229 = vst [vmem:[#allocation1] ss:$2 sm:$0xff] %v226_v0  ;;  %s353_s5 = scalar_lea.hbm %s868_s2, %s481_s21  ;;  %s223_s6 = scalar_lea.vmem [#allocation7], %s804_s29 }
  0x26   : > { %s355_s7 = sshll.u32 %s223_s6, 4  ;;  %s357_s8 = sshll.u32 %s353_s5, 4  ;;  %s356_s7 = int_to_ptr.vmem [resolvable:$true] %s355_s7  ;;  %s358_s8 = int_to_ptr.hbm [resolvable:$true] %s357_s8 }
  0x27   : > { %s342_s16 = scalar_lea.sflag [#allocation4], %s801_s19  ;;  %s635_s18 = sshra.s32 %s358_s8, 4  ;;  %s636_s18 = int_to_ptr.hbm [resolvable:$true] %s635_s18 }
  0x28   : > { %s637_s20 = scalar_lea.hbm %s636_s18, 8  ;;  %s641_s30 = scalar_lea.hbm %s868_s2, 16 }
  0x29   : > { %p638_p4 = scmp.ne.s32.totalorder %s636_s18, %s637_s20  ;;  %p642_p7 = scmp.lt.s32.totalorder %s636_s18, %s868_s2 }
  0x2a   : > { %p643_p8 = scmp.lt.s32.totalorder %s641_s30, %s637_s20 }
  0x2b   : > { %p639_p5 = pnand %p638_p4, %p775_p9 }
  0x2c   : > { %v230_v1 = vld.sshfl [vmem:[#allocation1] sm:$0xff pattern:$0x75316420]  ;;  %v231_v2 = vld.sshfl [vmem:[#allocation1 + $0x8] sm:$0xff pattern:$0x75316420]  ;;  %p644_p10 = por %p643_p8, %p642_p7 }
  0x2d   : > { %v235_v3 = vsel %vm234_vm0, %v230_v1, -inf  ;;  %v242_v4 = vsel %vm234_vm0, %v231_v2, -inf  ;;  %p640_p6 = pneg %p639_p5 }
  0x2e   : > { %v236_v5 = vrot.slane %v235_v3, 4  ;;  %v243_v6 = vrot.slane %v242_v4, 4 }
  0x2f   : > { %p645_p13 = pnand %p644_p10, %p640_p6 }
  0x30   : > { %v237_v7 = vmax.f32 %v235_v3, %v236_v5  ;;  %v244_v8 = vmax.f32 %v242_v4, %v243_v6 }
  0x32   : > { %v238_v9 = vrot.slane %v237_v7, 2  ;;  %v245_v10 = vrot.slane %v244_v8, 2 }
  0x34   : > { %v239_v11 = vmax.f32 %v237_v7, %v238_v9  ;;  %v246_v12 = vmax.f32 %v244_v8, %v245_v10 }
  0x36   : > { %v240_v13 = vrot.slane %v239_v11, 1  ;;  %v247_v14 = vrot.slane %v246_v12, 1 }
  0x38   : > { %v241_v15 = vmax.f32 %v239_v11, %v240_v13  ;;  %v248_v16 = vmax.f32 %v246_v12, %v247_v14 }
  0x3a   : > { %v251_v17 = vrot.slane %v248_v16, 4 }
  0x3c   : > { %v252_v18 = vsel %vm234_vm0, %v241_v15, %v251_v17 }
  0x3d   : > { %v254_v19 = vsub.f32 %v226_v0, %v252_v18 }
  0x3f   : > { %v255_v20 = vmul.f32 1.442695, %v254_v19  ;;  %v301_v31 = vmul.f32 %v254_v19, %v227_v22 }
  0x41   : > { %555 = vpow2.f32 %v255_v20 }
  0x47   : > { %v556_v21 = vpop.eup %555 }
  0x48   : > { %258 = vst [vmem:[#allocation1] ss:$2 sm:$0xff] %v556_v21 }
  0x4f   : > { %v259_v23 = vld.sshfl [vmem:[#allocation1] sm:$0xff pattern:$0x75316420]  ;;  %v260_v24 = vld.sshfl [vmem:[#allocation1 + $0x8] sm:$0xff pattern:$0x75316420] }
  0x50   : > { %v263_v25 = vsel %vm234_vm0, %v259_v23, 0.0  ;;  %v270_v26 = vsel %vm234_vm0, %v260_v24, 0.0  ;;  %282 = vst [vmem:[#allocation1] ss:$2 sm:$0xff] %v227_v22 }
  0x51   : > { %v264_v27 = vrot.slane %v263_v25, 4  ;;  %v271_v28 = vrot.slane %v270_v26, 4 }
  0x53   : > { %v265_v29 = vadd.f32 %v264_v27, %v263_v25  ;;  %v272_v30 = vadd.f32 %v271_v28, %v270_v26 }
  0x55   : > { %v266_v32 = vrot.slane %v265_v29, 2  ;;  %v273_v33 = vrot.slane %v272_v30, 2 }
  0x57   : > { %v267_v34 = vadd.f32 %v266_v32, %v265_v29  ;;  %v274_v35 = vadd.f32 %v273_v33, %v272_v30  ;;  %v283_v36 = vld.sshfl [vmem:[#allocation1] sm:$0xff pattern:$0x75316420]  ;;  %v284_v37 = vld.sshfl [vmem:[#allocation1 + $0x8] sm:$0xff pattern:$0x75316420] }
  0x58   : > { %v287_v38 = vsel %vm234_vm0, %v283_v36, 0.0  ;;  %v294_v39 = vsel %vm234_vm0, %v284_v37, 0.0  ;;  %303 = vst [vmem:[#allocation1] ss:$2 sm:$0xff] %v301_v31 }
  0x59   : > { %v268_v40 = vrot.slane %v267_v34, 1  ;;  %v275_v41 = vrot.slane %v274_v35, 1  ;;  %v288_v42 = vrot.slane %v287_v38, 4  ;;  %v295_v43 = vrot.slane %v294_v39, 4 }
  0x5b   : > { %v269_v44 = vadd.f32 %v268_v40, %v267_v34  ;;  %v276_v45 = vadd.f32 %v275_v41, %v274_v35  ;;  %v289_v46 = vadd.f32 %v288_v42, %v287_v38  ;;  %v296_v47 = vadd.f32 %v295_v43, %v294_v39 }
  0x5d   : > { %557 = vlog2.f32 %v269_v44  ;;  %v290_v48 = vrot.slane %v289_v46, 2  ;;  %v297_v49 = vrot.slane %v296_v47, 2 }
  0x5e   : > { %559 = vlog2.f32 %v276_v45 }
  0x5f   : > { %v291_v50 = vadd.f32 %v290_v48, %v289_v46  ;;  %v298_v51 = vadd.f32 %v297_v49, %v296_v47  ;;  %v304_v52 = vld.sshfl [vmem:[#allocation1] sm:$0xff pattern:$0x75316420]  ;;  %v305_v53 = vld.sshfl [vmem:[#allocation1 + $0x8] sm:$0xff pattern:$0x75316420] }
  0x60   : > { %v308_v54 = vsel %vm234_vm0, %v304_v52, 0.0  ;;  %v315_v55 = vsel %vm234_vm0, %v305_v53, 0.0 }
  0x61   : > { %v292_v56 = vrot.slane %v291_v50, 1  ;;  %v299_v57 = vrot.slane %v298_v51, 1  ;;  %v309_v58 = vrot.slane %v308_v54, 4  ;;  %v316_v59 = vrot.slane %v315_v55, 4 }
  0x63   : > { %v558_v60 = vpop.eup %557  ;;  %v310_v61 = vadd.f32 %v309_v58, %v308_v54  ;;  %v317_v62 = vadd.f32 %v316_v59, %v315_v55  ;;  %v293_v0 = vadd.f32 %v292_v56, %v291_v50  ;;  %v300_v1 = vadd.f32 %v299_v57, %v298_v51 }
  0x64   : > { %v560_v63 = vpop.eup %559  ;;  %v278_v2 = vmul.f32 0.6931472, %v558_v60 }
  0x65   : > { %v280_v3 = vmul.f32 0.6931472, %v560_v63  ;;  %v311_v4 = vrot.slane %v310_v61, 2  ;;  %v318_v5 = vrot.slane %v317_v62, 2 }
  0x66   : > { %v322_v10 = vmul.f32 %v293_v0, %v278_v2 }
  0x67   : > { %v312_v6 = vadd.f32 %v311_v4, %v310_v61  ;;  %v319_v7 = vadd.f32 %v318_v5, %v317_v62  ;;  %v323_v11 = vmul.f32 %v300_v1, %v280_v3 }
  0x69   : > { %v313_v8 = vrot.slane %v312_v6, 1  ;;  %v320_v9 = vrot.slane %v319_v7, 1 }
  0x6b   : > { %v314_v12 = vadd.f32 %v313_v8, %v312_v6  ;;  %v321_v13 = vadd.f32 %v320_v9, %v319_v7 }
  0x6d   : > { %v324_v14 = vsub.f32 %v322_v10, %v314_v12  ;;  %v325_v15 = vsub.f32 %v323_v11, %v321_v13 }
  0x6f   : > { %v327_v16 = vsel %vm326_vm1, %v324_v14, 0.0  ;;  %v328_v17 = vsel %vm326_vm1, %v325_v15, 0.0 }
  0x70   : > { %v329_v18 = vadd.f32 %v328_v17, %v327_v16 }
  0x72   : > { %330 = vadd.xlane.f32.xlu0 %v329_v18 }
  0xe5   : > { %v331_v19 = vpop.xlane.xlu0 %330 }
  0xe6   : > { %v332_v20 = vrot.slane %v331_v19, 4 }
  0xe8   : > { %v333_v21 = vadd.f32 %v332_v20, %v331_v19 }
  0xea   : > { %v334_v22 = vrot.slane %v333_v21, 2 }
  0xec   : > { %v335_v23 = vadd.f32 %v334_v22, %v333_v21 }
  0xee   : > { %v336_v24 = vrot.slane %v335_v23, 1 }
  0xf0   : > { %v337_v25 = vadd.f32 %v336_v24, %v335_v23 }
  0xf2   : > { %486 = vpush %v337_v25 }
 0x123   : > { %s487_s15 = spop %486 }
 0x124   : > { %v339_v26 = vstv %s487_s15 }
 0x125   : > { %340 = vst [vmem:[%s223_s6] sm:$0xff] %v339_v26 }
 0x126   : > { %648 = shalt.err (!%p645_p13)
}
 0x127   : > { %492 = dma.vmem_to_hbm [thread:$0]  (%p775_p9), %s356_s7, 128, %s358_s8, %s342_s16  }
 0x128 PF: > { %s369_s19 = sand.u32 1, %s687_s9   ;;  %p502_p0 = pnand %p469_p12, %p782_p11 }
 0x129   : > { %s370_s25 = scalar_lea.sflag [#allocation4], %s369_s19 }
 0x12a   : > { %p503_p1 = pneg %p502_p0 }
 0x12c   : > { %682 = dma.done.wait (%p503_p1), %s370_s25, 128  }
 0x12d   : > { %684 = vsyncadd (%p503_p1), %s370_s25, 4294967168  ;;  %s21_s14 = sadd.s32 1, %s707_s14   ;;  %s873_s9 = smov %s691_s10 }
 0x12e   : > { %p18_p2 = scmp.ge.s32.totalorder %s21_s14, 4   ;;  %s874_s10 = smov %s695_s11 }
 0x12f   : > { %s875_s11 = smov %s780_s23  ;;  %s876_s12 = smov %s703_s13 }
 0x130   : > { %s877_s13 = smov %s879_s17  ;;  %20 = sbr.rel (!%p18_p2) target bundleno = 8 (0x8), region = 86 }
 0x135   :  { %376 = vsyncpa [#allocation3], 1 }
 0x136   :  { %378 = vsyncpa [#allocation3 + $0x1], 1 }
 0x137   :  { %379 = vsyncpa [#allocation6], 1 }
 0x138   :  { %381 = vsyncpa [#allocation6 + $0x1], 1 }
 0x139   :  { %382 = vsyncpa [#allocation4], 1 }
 0x13a   :  { %384 = vsyncpa [#allocation4 + $0x1], 1 }

</bundles_post_ra>
